<compile_context>
chip_gen: v6e
topology: v6e:2x2x1
jax: 0.10.0
libtpu: 0.0.40
codegen_flags: <defaults>
</compile_context>

<pallas_src>
import functools

import jax
import jax.numpy as jnp
from jax.experimental import pallas as pl
from jax.experimental.pallas import tpu as pltpu


def _round_up(v: int, m: int) -> int:
    return (v + m - 1) // m * m


# ----------------------------------------------------------------------------
# Kernel 1: fused projection  x @ [Ws^T | (1-a)W1^T | a W2^T]  (+ bias fold)
# ----------------------------------------------------------------------------
def _project_kernel(x_ref, w_all_ref, b_ref, h_ref, xw_ref, *, out_pad):
    prod = jnp.dot(x_ref[...], w_all_ref[...],
                   preferred_element_type=jnp.float32)     # (TM, 3*OUT_PAD) f32
    h_ref[...] = prod[:, :out_pad] + b_ref[...]            # self term + folded bias
    xw_ref[...] = prod[:, out_pad:].astype(xw_ref.dtype)   # neighbor projections


# ----------------------------------------------------------------------------
# Kernel 2: out = h_base + inv_in * (A_sd_counts @ xw1) + inv_out * (A_ds_counts @ xw2)
#   * A tiles arrive as int8 raw counts; exact f32 1/deg scaling per step.
#   * Accumulates directly into the resident f32 output block (no scratch).
# ----------------------------------------------------------------------------
def _agg_kernel(h_ref, inv_sd_ref, inv_ds_ref, a_sd_ref, a_ds_ref, xw_ref, o_ref,
                *, out_pad, block_k, xw_resident):
    k = pl.program_id(1)

    @pl.when(k == 0)
    def _():
        o_ref[...] = h_ref[...]

    if xw_resident:
        # Whole xw lives in VMEM (constant block index); slice the k-th chunk.
        base = pl.multiple_of(k * block_k, block_k)
        xw = xw_ref[pl.ds(base, block_k), :]
    else:
        xw = xw_ref[...]

    # int8 counts -> f32 -> compute dtype (MXU never sees int8; works on v7x).
    a_sd = a_sd_ref[...].astype(jnp.float32).astype(xw.dtype)
    a_ds = a_ds_ref[...].astype(jnp.float32).astype(xw.dtype)

    o_ref[...] += (
        inv_sd_ref[...] * jnp.dot(a_sd, xw[:, :out_pad],
                                  preferred_element_type=jnp.float32)
        + inv_ds_ref[...] * jnp.dot(a_ds, xw[:, out_pad:],
                                    preferred_element_type=jnp.float32))


# ----------------------------------------------------------------------------
# Wrapper
# ----------------------------------------------------------------------------
def dir_sage_conv(x, edge_index, params, alpha, *,
                  compute_dtype=jnp.bfloat16,
                  block_m=512, block_k=1024,
                  xw_resident_budget_bytes=8 * 1024 * 1024):
    """x: (N, F_in) float32, edge_index: (2, E) int32."""
    n, in_dim = x.shape
    out_dim = params["w_self"].shape[0]

    in_pad = _round_up(in_dim, 128)
    out_pad = _round_up(out_dim, 128)

    # ---- adaptive padding / tiling (no lcm over-padding of small graphs) ----
    n_pad = _round_up(n, 128)
    if n_pad > 256:
        n_pad = _round_up(n, 256)
    block_m = min(block_m, n_pad)
    block_k = min(block_k, n_pad)
    while n_pad % block_m:
        block_m //= 2
    while n_pad % block_k:
        block_k //= 2
    # Megacore balance (v7x has 2 TCs): keep >= 2 row tiles when possible.
    if n_pad // block_m < 2 and block_m >= 16:
        block_m //= 2

    # ---- host-side graph prep (O(E) degree math, counts scattered as int8) --
    src = edge_index[0].astype(jnp.int32)
    dst = edge_index[1].astype(jnp.int32)
    one8 = jnp.ones(src.shape, jnp.int8)

    a_sd = jnp.zeros((n_pad, n_pad), jnp.int8).at[dst, src].add(one8)  # in-edge counts
    a_ds = jnp.zeros((n_pad, n_pad), jnp.int8).at[src, dst].add(one8)  # out-edge counts

    deg_in = jnp.zeros((n_pad,), jnp.float32).at[dst].add(1.0)
    deg_out = jnp.zeros((n_pad,), jnp.float32).at[src].add(1.0)
    inv_in = (1.0 / jnp.maximum(deg_in, 1.0)).reshape(n_pad, 1)
    inv_out = (1.0 / jnp.maximum(deg_out, 1.0)).reshape(n_pad, 1)

    def pad2(a, rows, cols):
        return jnp.pad(a, ((0, rows - a.shape[0]), (0, cols - a.shape[1])))

    x_p = pad2(x.astype(jnp.float32), n_pad, in_pad).astype(compute_dtype)

    # Fold alpha into the neighbor weights, sum all biases into one vector.
    alpha = jnp.asarray(alpha, jnp.float32)
    ws_t = params["w_self"].astype(jnp.float32).T                    # (in, out)
    w1_t = params["w_sd"].astype(jnp.float32).T * (1.0 - alpha)      # (in, out)
    w2_t = params["w_ds"].astype(jnp.float32).T * alpha              # (in, out)
    w_all = jnp.concatenate(
        [pad2(ws_t, in_pad, out_pad),
         pad2(w1_t, in_pad, out_pad),
         pad2(w2_t, in_pad, out_pad)], axis=1).astype(compute_dtype)  # (in_pad, 3*out_pad)

    b_total = (params["b_self"].astype(jnp.float32)
               + (1.0 - alpha) * params["b_sd"].astype(jnp.float32)
               + alpha * params["b_ds"].astype(jnp.float32))
    b_total = jnp.pad(b_total, (0, out_pad - out_dim)).reshape(1, out_pad)

    # --- Kernel 1: projection (big independent row tile; step-overhead bound)
    block_m1 = min(1024, n_pad)
    while n_pad % block_m1:
        block_m1 //= 2
    if n_pad // block_m1 < 2 and block_m1 >= 16:
        block_m1 //= 2

    h_base, xw = pl.pallas_call(
        functools.partial(_project_kernel, out_pad=out_pad),
        out_shape=(jax.ShapeDtypeStruct((n_pad, out_pad), jnp.float32),
                   jax.ShapeDtypeStruct((n_pad, 2 * out_pad), compute_dtype)),
        grid_spec=pltpu.PrefetchScalarGridSpec(
            num_scalar_prefetch=0,
            grid=(n_pad // block_m1,),
            in_specs=[
                pl.BlockSpec((block_m1, in_pad), lambda i: (i, 0)),
                pl.BlockSpec((in_pad, 3 * out_pad), lambda i: (0, 0)),
                pl.BlockSpec((1, out_pad), lambda i: (0, 0)),
            ],
            out_specs=[
                pl.BlockSpec((block_m1, out_pad), lambda i: (i, 0)),
                pl.BlockSpec((block_m1, 2 * out_pad), lambda i: (i, 0)),
            ],
        ),
        compiler_params=pltpu.CompilerParams(
            dimension_semantics=("parallel",),
            vmem_limit_bytes=48 * 1024 * 1024),
    )(x_p, w_all, b_total)

    # --- Kernel 2: tiled adjacency aggregation -------------------------------
    xw_bytes = n_pad * 2 * out_pad * jnp.dtype(compute_dtype).itemsize
    xw_resident = xw_bytes <= xw_resident_budget_bytes
    if xw_resident:
        # Constant block index -> fetched once, never re-streamed per row tile.
        xw_spec = pl.BlockSpec((n_pad, 2 * out_pad), lambda i, k: (0, 0))
    else:
        xw_spec = pl.BlockSpec((block_k, 2 * out_pad), lambda i, k: (k, 0))

    out = pl.pallas_call(
        functools.partial(_agg_kernel, out_pad=out_pad, block_k=block_k,
                          xw_resident=xw_resident),
        out_shape=jax.ShapeDtypeStruct((n_pad, out_pad), jnp.float32),
        grid_spec=pltpu.PrefetchScalarGridSpec(
            num_scalar_prefetch=0,
            grid=(n_pad // block_m, n_pad // block_k),
            in_specs=[
                pl.BlockSpec((block_m, out_pad), lambda i, k: (i, 0)),   # h_base
                pl.BlockSpec((block_m, 1), lambda i, k: (i, 0)),         # 1/deg_in
                pl.BlockSpec((block_m, 1), lambda i, k: (i, 0)),         # 1/deg_out
                pl.BlockSpec((block_m, block_k), lambda i, k: (i, k)),   # A_sd counts (int8)
                pl.BlockSpec((block_m, block_k), lambda i, k: (i, k)),   # A_ds counts (int8)
                xw_spec,                                                 # xw
            ],
            out_specs=pl.BlockSpec((block_m, out_pad), lambda i, k: (i, 0)),
        ),
        compiler_params=pltpu.CompilerParams(
            dimension_semantics=("parallel", "arbitrary"),
            vmem_limit_bytes=48 * 1024 * 1024),
    )(h_base, inv_in, inv_out, a_sd, a_ds, xw)

    return out[:n, :out_dim]


# ----------------------------------------------------------------------------
# Pure-JAX reference (segment-mean formulation, matches PyG semantics)
# ----------------------------------------------------------------------------
def reference(x, edge_index, params, alpha):
    n = x.shape[0]
    src, dst = edge_index[0], edge_index[1]

    def scatter_mean(values_idx, gather_idx):
        summed = jnp.zeros((n, x.shape[1]), jnp.float32).at[values_idx].add(x[gather_idx])
        cnt = jnp.zeros((n, 1), jnp.float32).at[values_idx].add(1.0)
        return summed / jnp.maximum(cnt, 1.0)

    agg_sd = scatter_mean(dst, src)   # node i gathers x[j] over edges j->i
    agg_ds = scatter_mean(src, dst)   # node i gathers x[j] over edges i->j

    h_self = x @ params["w_self"].T + params["b_self"]
    h_sd = agg_sd @ params["w_sd"].T + params["b_sd"]
    h_ds = agg_ds @ params["w_ds"].T + params["b_ds"]
    return h_self + (1.0 - alpha) * h_sd + alpha * h_ds


if __name__ == "__main__":
    key = jax.random.PRNGKey(0)
    N, E = 16, 32
    IN_DIM, OUT_DIM = 8, 8
    ALPHA = 0.5

    k_x, k_e1, k_e2, k_ws, k_bs, k_w1, k_b1, k_w2, k_b2 = jax.random.split(key, 9)

    x = jax.random.normal(k_x, (N, IN_DIM), jnp.float32)
    edge_index = jnp.stack([
        jax.random.randint(k_e1, (E,), 0, N),
        jax.random.randint(k_e2, (E,), 0, N),
    ]).astype(jnp.int32)

    scale_in = 1.0 / (IN_DIM ** 0.5)
    params = {
        "w_self": jax.random.normal(k_ws, (OUT_DIM, IN_DIM), jnp.float32) * scale_in,
        "b_self": jax.random.normal(k_bs, (OUT_DIM,), jnp.float32) * 0.01,
        "w_sd":   jax.random.normal(k_w1, (OUT_DIM, IN_DIM), jnp.float32) * scale_in,
        "b_sd":   jax.random.normal(k_b1, (OUT_DIM,), jnp.float32) * 0.01,
        "w_ds":   jax.random.normal(k_w2, (OUT_DIM, IN_DIM), jnp.float32) * scale_in,
        "b_ds":   jax.random.normal(k_b2, (OUT_DIM,), jnp.float32) * 0.01,
    }

    ref = reference(x, edge_index, params, ALPHA)

    # f32 MXU path — tight check (counts + 1/deg normalization are exact f32).
    out_f32 = jax.block_until_ready(
        dir_sage_conv(x, edge_index, params, ALPHA, compute_dtype=jnp.float32))
    assert out_f32.shape == (N, OUT_DIM)
    assert jnp.allclose(out_f32, ref, atol=2e-3, rtol=2e-3), "f32 mismatch vs. JAX reference"

    # bf16 MXU path (default performance config) — loose check.
    out_bf16 = jax.block_until_ready(dir_sage_conv(x, edge_index, params, ALPHA))
    assert out_bf16.shape == (N, OUT_DIM)
    assert jnp.allclose(out_bf16, ref, atol=5e-2, rtol=5e-2), "bf16 mismatch vs. JAX reference"

    print("KERNEL_OK")
</pallas_src>

<mosaic_0001>
module attributes {stable_mosaic.version = 11 : i64} {
  func.func @_project_kernel(%arg0: i32, %arg1: memref<64x128xf32, #tpu.memory_space<vmem>>, %arg2: memref<128x384xf32, #tpu.memory_space<vmem>>, %arg3: memref<1x128xf32, #tpu.memory_space<vmem>>, %arg4: memref<64x128xf32, #tpu.memory_space<vmem>>, %arg5: memref<64x256xf32, #tpu.memory_space<vmem>>) attributes {dimension_semantics = [#tpu.dimension_semantics<parallel>], iteration_bounds = array<i64: 2>, scalar_prefetch = 0 : i64, scratch_operands = 0 : i64, tpu.core_type = #tpu.core_type<tc>, window_params = [{transform_indices = @transform_0, window_bounds = array<i64: 64, 128>}, {pipeline_mode = #tpu.pipeline_mode<synchronous>, transform_indices = @transform_1, window_bounds = array<i64: 128, 384>}, {pipeline_mode = #tpu.pipeline_mode<synchronous>, transform_indices = @transform_2, window_bounds = array<i64: 1, 128>}, {transform_indices = @transform_3, window_bounds = array<i64: 64, 128>}, {transform_indices = @transform_4, window_bounds = array<i64: 64, 256>}]} {
    %c0 = arith.constant 0 : index
    %c0_0 = arith.constant 0 : index
    %0 = vector.load %arg1[%c0, %c0_0] : memref<64x128xf32, #tpu.memory_space<vmem>>, vector<64x128xf32>
    %c0_1 = arith.constant 0 : index
    %c0_2 = arith.constant 0 : index
    %1 = vector.load %arg2[%c0_1, %c0_2] : memref<128x384xf32, #tpu.memory_space<vmem>>, vector<128x384xf32>
    %cst = arith.constant dense<0.000000e+00> : vector<64x384xf32>
    %2 = tpu.matmul %0, %1, %cst {dimension_numbers = #tpu.dot_dimension_numbers<[1], [0], [0], [1], [0, 0, 1, 1], [], []>} : vector<64x128xf32>, vector<128x384xf32>, vector<64x384xf32> -> vector<64x384xf32>
    %3 = vector.extract_strided_slice %2 {offsets = [0, 0], sizes = [64, 128], strides = [1, 1]} : vector<64x384xf32> to vector<64x128xf32>
    %c0_3 = arith.constant 0 : index
    %c0_4 = arith.constant 0 : index
    %4 = vector.load %arg3[%c0_3, %c0_4] : memref<1x128xf32, #tpu.memory_space<vmem>>, vector<1x128xf32>
    %5 = vector.broadcast %4 : vector<1x128xf32> to vector<64x128xf32>
    %6 = arith.addf %3, %5 : vector<64x128xf32>
    %c0_5 = arith.constant 0 : index
    %c0_6 = arith.constant 0 : index
    %7 = vector.load %arg4[%c0_5, %c0_6] : memref<64x128xf32, #tpu.memory_space<vmem>>, vector<64x128xf32>
    tpu.vector_store %arg4[%c0_5, %c0_6], %6 {strides = array<i32>} : memref<64x128xf32, #tpu.memory_space<vmem>>, vector<64x128xf32>,
    %8 = vector.extract_strided_slice %2 {offsets = [0, 128], sizes = [64, 256], strides = [1, 1]} : vector<64x384xf32> to vector<64x256xf32>
    %c0_7 = arith.constant 0 : index
    %c0_8 = arith.constant 0 : index
    %9 = vector.load %arg5[%c0_7, %c0_8] : memref<64x256xf32, #tpu.memory_space<vmem>>, vector<64x256xf32>
    tpu.vector_store %arg5[%c0_7, %c0_8], %8 {strides = array<i32>} : memref<64x256xf32, #tpu.memory_space<vmem>>, vector<64x256xf32>,
    return
  }
  func.func @transform_0(%arg0: i32) -> (i32, i32) {
    %c0_i32 = arith.constant 0 : i32
    %c0_i32_0 = arith.constant 0 : i32
    return %arg0, %c0_i32 : i32, i32
  }
  func.func @transform_1(%arg0: i32) -> (i32, i32) {
    %c0_i32 = arith.constant 0 : i32
    %c0_i32_0 = arith.constant 0 : i32
    %c0_i32_1 = arith.constant 0 : i32
    return %c0_i32, %c0_i32_0 : i32, i32
  }
  func.func @transform_2(%arg0: i32) -> (i32, i32) {
    %c0_i32 = arith.constant 0 : i32
    %c0_i32_0 = arith.constant 0 : i32
    %c0_i32_1 = arith.constant 0 : i32
    return %c0_i32, %c0_i32_0 : i32, i32
  }
  func.func @transform_3(%arg0: i32) -> (i32, i32) {
    %c0_i32 = arith.constant 0 : i32
    %c0_i32_0 = arith.constant 0 : i32
    return %arg0, %c0_i32 : i32, i32
  }
  func.func @transform_4(%arg0: i32) -> (i32, i32) {
    %c0_i32 = arith.constant 0 : i32
    %c0_i32_0 = arith.constant 0 : i32
    return %arg0, %c0_i32 : i32, i32
  }
}

</mosaic_0001>

<bundles_post_ra>
// kernel: tpu_custom_call.1
= control target key start
LH: loop header
LB: loop body
LE: loop exit
PB: predicated region body
PF: predicated region fallthrough
CT: control target
= control target key end

     0   :  { %10 = vsyncpa [#allocation3], 0  ;;  %s1330_s0 = inlined_call_operand.hbm [shape: f32[128,128], index: 0, kind: input, shape index: {}]   ;;  %s1331_s1 = inlined_call_operand.hbm [shape: f32[128,384], index: 1, kind: input, shape index: {}]   ;;  %s1332_s2 = inlined_call_operand.vmem [shape: f32[1,128], index: 2, kind: input, shape index: {}]   ;;  %s1333_s3 = inlined_call_operand.hbm [shape: f32[128,128], index: 3, kind: output, shape index: {0}]   ;;  %s1334_s4 = inlined_call_operand.hbm [shape: f32[128,256], index: 4, kind: output, shape index: {1}]  }
   0x1   :  { %12 = vsyncpa [#allocation3 + $0x1], 0 }
   0x2   :  { %13 = vsyncpa [#allocation6], 0 }
   0x3   :  { %14 = vsyncpa [#allocation4], 0 }
   0x4   :  { %16 = vsyncpa [#allocation4 + $0x1], 0 }
   0x5   :  { %17 = vsyncpa [#allocation9], 0 }
   0x6   :  { %19 = vsyncpa [#allocation9 + $0x1], 0  ;;  %s1066_s15 = smov 0   ;;  %s1068_s16 = smov 0  }
   0x7   :  { %s1070_s17 = smov 0   ;;  %s1072_s18 = smov 0  }
   0x8 LB: > { %s1087_s19 = sadd.s32 4294967295, %s1026_s18   ;;  %s709_s20 = sadd.s32 4294967294, %s1026_s18   ;;  %s1026_s18 = sphi %s1072_s18, %s1356_s18   ;;  %s1022_s17 = sphi %s1070_s17, %s1355_s17   ;;  %s1018_s16 = sphi %s1068_s16, %s1354_s16   ;;  %s1014_s15 = sphi %s1066_s15, %s1353_s15  }
   0x9   : > { %p45_p0 = scmp.ne.s32.totalorder %s1018_s16, %s1014_s15  ;;  %p1335_p1 = scmp.eq.s32.totalorder %s1087_s19, 0 }
   0xa   : > { %p117_p3 = scmp.eq.s32.totalorder %s709_s20, 1  ;;  %p710_p5 = scmp.ge.s32.totalorder %s1026_s18, 1 }
   0xb   : > { %p1096_p4 = por %p1335_p1, %p45_p0  ;;  %p150_p7 = scmp.lt.s32.totalorder %s1026_s18, 3 }
   0xc   : > { %p1101_p6 = por %p117_p3, %p45_p0  ;;  %s1028_s24 = smov [#allocation5]  }
   0xd   : > { %s1339_s21 = scalar_select %p1096_p4, 1, 0 }
   0xe   : > { %s1340_s22 = scalar_select %p1101_p6, 1, 0 }
   0xf   : > { %p1106_p8 = pnand %p710_p5, %p150_p7  ;;  %s162_s25 = sshll.u32 %s1028_s24, 4  ;;  %s163_s25 = int_to_ptr.vmem [resolvable:$true] %s162_s25 }
  0x10   : > { %s1120_s27 = sadd.s32 1, %s1026_s18   ;;  %s32_s28 = sadd.s32 1, %s1022_s17 }
  0x11   : > { %s1341_s23 = scalar_select %p1106_p8, 1, 0 }
  0x12   : > { %p813_p9 = pneg %p1106_p8  ;;  %s29_s29 = ssub.s32 %s1026_s18, %s1120_s27 }
  0x13   : > { %s885_s30 = scalar_lea.vmem %s163_s25, 6144  ;;  %p893_p5 = scmp.lt.s32.totalorder %s163_s25, %s163_s25 }
  0x14   : > { %p1115_p11 = pnand %p813_p9, %p1335_p1  ;;  %p886_p13 = scmp.ne.s32.totalorder %s163_s25, %s885_s30 }
  0x15   : > { %p894_p7 = scmp.lt.s32.totalorder %s885_s30, %s885_s30 }
  0x16   : > { %p876_p12 = pneg %p1115_p11 }
  0x17   : > { %p895_p10 = por %p894_p7, %p893_p5 }
  0x18   : > { %p888_p0 = pnand %p886_p13, %p876_p12 }
  0x1a   : > { %p889_p3 = pneg %p888_p0 }
  0x1c   : > { %p896_p2 = pnand %p895_p10, %p889_p3 }
  0x1e   : > { %899 = shalt.err (!%p896_p2)
}
  0x1f   : > { %s1029_s5 = smov 384   ;;  %s1030_s6 = smov 24  }
  0x20   : > { %816 = dma.hbm_to_vmem [thread:$0]  (!%p1115_p11), %s1331_s1, 6144, %s163_s25, [#allocation6], %s1029_s5, %s1029_s5, %s1030_s6  }
  0x21   : > { %p30_p9 = scmp.eq.s32.totalorder %s29_s29, 0  ;;  %p39_p12 = scmp.ne.s32.totalorder %s1022_s17, %s1018_s16 }
  0x22   : > { %p40_p10 = scmp.eq.s32.totalorder %s1026_s18, 0  ;;  %p829_p2 = scmp.lt.s32.totalorder %s1026_s18, 2 }
  0x23   : > { %s1137_s9 = scalar_select %p30_p9, %s1022_s17, %s32_s28  }
  0x24   : > { %p41_p13 = por %p40_p10, %p39_p12  ;;  %p1343_p0 = scmp.eq.s32.totalorder %s1087_s19, 1 }
  0x25   : > { %s179_s11 = sand.u32 1, %s1022_s17   ;;  %s731_s12 = sshll.u32 %s1026_s18, 10 }
  0x26   : > { %p1141_p3 = por %p1343_p0, %p39_p12  ;;  %s713_s13 = sshll.u32 %s179_s11, 6 }
  0x27   : > { %s1150_s24 = scalar_lea.hbm %s1330_s0, %s731_s12  ;;  %s183_s25 = scalar_lea.vmem [#allocation2], %s713_s13 }
  0x28   : > { %s1344_s10 = scalar_select %p1141_p3, 1, 0 }
  0x29   : > { %s190_s26 = sshll.u32 %s183_s25, 4  ;;  %p1152_p11 = pnand %p829_p2, %p41_p13  ;;  %s1156_s26 = int_to_ptr.vmem [resolvable:$true] %s190_s26 }
  0x2a   : > { %s1158_s29 = scalar_lea.sflag [#allocation3], %s179_s11  ;;  %s900_s30 = scalar_lea.hbm %s1150_s24, 1024 }
  0x2b   : > { %p901_p5 = scmp.ne.s32.totalorder %s1150_s24, %s900_s30  ;;  %p902_p7 = pneg %p1152_p11 }
  0x2c   : > { %s905_s7 = scalar_lea.hbm %s1330_s0, 2048  ;;  %p906_p10 = scmp.lt.s32.totalorder %s1150_s24, %s1330_s0 }
  0x2d   : > { %p903_p9 = pnand %p902_p7, %p901_p5  ;;  %p907_p2 = scmp.lt.s32.totalorder %s905_s7, %s900_s30 }
  0x2f   : > { %p904_p12 = pneg %p903_p9  ;;  %p908_p13 = por %p907_p2, %p906_p10 }
  0x31   : > { %p909_p0 = pnand %p908_p13, %p904_p12 }
  0x33   : > { %912 = shalt.err (!%p909_p0)
}
  0x34   : > { %s913_s11 = scalar_lea.vmem %s1156_s26, 1024  ;;  %s1031_s13 = smov [#allocation2]  }
  0x35   : > { %p914_p1 = scmp.ne.s32.totalorder %s1156_s26, %s913_s11  ;;  %s918_s14 = sshll.u32 %s1031_s13, 4  ;;  %s919_s14 = int_to_ptr.vmem [resolvable:$false] %s918_s14 }
  0x36   : > { %s920_s20 = scalar_lea.vmem %s919_s14, 2048  ;;  %p921_p9 = scmp.lt.s32.totalorder %s1156_s26, %s919_s14 }
  0x37   : > { %p916_p6 = pnand %p914_p1, %p902_p7  ;;  %p922_p3 = scmp.lt.s32.totalorder %s920_s20, %s913_s11 }
  0x39   : > { %p917_p5 = pneg %p916_p6  ;;  %p923_p4 = por %p922_p3, %p921_p9 }
  0x3b   : > { %p924_p8 = pnand %p923_p4, %p917_p5 }
  0x3d   : > { %927 = shalt.err (!%p924_p8)
}
  0x3e   : > { %s1032_s25 = smov 128   ;;  %s1033_s30 = smov 8  }
  0x3f   : > { %820 = dma.hbm_to_vmem [thread:$0]  (!%p1152_p11), %s1150_s24, 1024, %s1156_s26, %s1158_s29, %s1032_s25, %s1032_s25, %s1033_s30  }
  0x40   : > { %p1346_p1 = scmp.ne.s32.totalorder %s1341_s23, 0 }
  0x41   : > { %s1182_s5 = sand.u32 (!%p1346_p1), 1, %s1018_s16   ;;  %p1347_p4 = scmp.ne.s32.totalorder (!%p1346_p1), %s1339_s21, 0 }
  0x42   : > { %202 = sbr.rel (%p1346_p1) target bundleno = 368 (0x170), region = 32  ;;  %s717_s6 = sshll.u32 (!%p1346_p1), %s1182_s5, 6 }
  0x43   : > { %s205_s7 = scalar_lea.sflag (!%p1346_p1), [#allocation3], %s1182_s5  ;;  %s1188_s8 = scalar_lea.vmem (!%p1346_p1), [#allocation2], %s717_s6 }
  0x47   : > { %997 = dma.done.wait (%p1347_p4), %s205_s7, 1024  }
  0x48   : > { %999 = vsyncadd (%p1347_p4), %s205_s7, 4294966272  ;;  %p1348_p6 = scmp.eq.s32.totalorder %s1087_s19, 0 }
  0x4a   : > { %1001 = dma.done.wait (%p1348_p6), [#allocation6], 6144   ;;  %p1349_p8 = pmov %p1348_p6 }
  0x4b   : > { %v1034_v0 = vmov 0.0   ;;  %v299_v1 = vld [vmem:[#allocation5 + $0x170] sm:$0xff]  ;;  %v298_v2 = vld [vmem:[#allocation5 + $0x168] sm:$0xff]  ;;  %v296_v3 = vld [vmem:[#allocation5 + $0x158] sm:$0xff]  ;;  %s720_s21 = sshll.u32 %s1182_s5, 7  ;;  %s1220_s26 = scalar_lea.vmem [#allocation7], %s717_s6 }
  0x4c   : > { %1003 = vsyncadd (%p1349_p8), [#allocation6], 4294961152  ;;  %365 = vmatprep.mubr.f32.mxu0 %v1034_v0  ;;  %301 = vmatprep.subr.mxu0 %v299_v1  ;;  %v295_v4 = vld [vmem:[#allocation5 + $0x150] sm:$0xff]  ;;  %v293_v5 = vld [vmem:[#allocation5 + $0x140] sm:$0xff]  ;;  %s1223_s28 = scalar_lea.vmem [#allocation8], %s720_s21  ;;  %s577_s29 = sshll.u32 %s1220_s26, 4  ;;  %s1246_s29 = int_to_ptr.vmem [resolvable:$true] %s577_s29 }
  0x4d   : > { %302 = vmatpush1.msra.mxu0 %v298_v2  ;;  %v292_v6 = vld [vmem:[#allocation5 + $0x138] sm:$0xff]  ;;  %v290_v7 = vld [vmem:[#allocation5 + $0x128] sm:$0xff]  ;;  %v289_v8 = vld [vmem:[#allocation5 + $0x120] sm:$0xff]  ;;  %s732_s12 = sshll.u32 %s1087_s19, 10  ;;  %s734_s11 = sshll.u32 %s1087_s19, 11 }
  0x4e   : > { %303 = vmatprep.subr.mxu0 %v296_v3  ;;  %v300_v9 = vld [vmem:[#allocation5 + $0x178] sm:$0xff]  ;;  %v287_v10 = vld [vmem:[#allocation5 + $0x110] sm:$0xff]  ;;  %v297_v11 = vld [vmem:[#allocation5 + $0x160] sm:$0xff]  ;;  %s1252_s20 = scalar_lea.hbm %s1333_s3, %s732_s12  ;;  %s594_s25 = sshll.u32 %s1223_s28, 4  ;;  %s1262_s25 = int_to_ptr.vmem [resolvable:$true] %s594_s25 }
  0x4f   : > { %304 = vmatpush1.msra.mxu0 %v295_v4  ;;  %759 = vmatprep.subr.mxu1 %v300_v9  ;;  %v286_v12 = vld [vmem:[#allocation5 + $0x108] sm:$0xff]  ;;  %v284_v14 = vld [vmem:[#allocation5 + $0xf8] sm:$0xff]  ;;  %v283_v15 = vld [vmem:[#allocation5 + $0xf0] sm:$0xff]  ;;  %s1260_s7 = scalar_lea.hbm %s1334_s4, %s734_s11  ;;  %s559_s19 = scalar_lea.sflag [#allocation4], %s1182_s5 }
  0x50   : > { %305 = vmatprep.subr.mxu0 %v293_v5  ;;  %760 = vmatpush3.msra.mxu1 %v300_v9  ;;  %v294_v13 = vld [vmem:[#allocation5 + $0x148] sm:$0xff]  ;;  %v291_v16 = vld [vmem:[#allocation5 + $0x130] sm:$0xff]  ;;  %v281_v17 = vld [vmem:[#allocation5 + $0xe0] sm:$0xff]  ;;  %p1350_p11 = scmp.ne.s32.totalorder %s1344_s10, 0  ;;  %s1035_s21 = smov [#allocation7]  }
  0x51   : > { %306 = vmatpush1.msra.mxu0 %v292_v6  ;;  %761 = vmatprep.subr.mxu1 %v297_v11  ;;  %v280_v18 = vld [vmem:[#allocation5 + $0xd8] sm:$0xff]  ;;  %v278_v20 = vld [vmem:[#allocation5 + $0xc8] sm:$0xff]  ;;  %v277_v21 = vld [vmem:[#allocation5 + $0xc0] sm:$0xff]  ;;  %s932_s23 = sshll.u32 %s1035_s21, 4  ;;  %s933_s23 = int_to_ptr.vmem [resolvable:$false] %s932_s23 }
  0x52   : > { %307 = vmatprep.subr.mxu0 %v290_v7  ;;  %762 = vmatpush3.msra.mxu1 %v297_v11  ;;  %v288_v19 = vld [vmem:[#allocation5 + $0x118] sm:$0xff]  ;;  %v285_v22 = vld [vmem:[#allocation5 + $0x100] sm:$0xff]  ;;  %v275_v23 = vld [vmem:[#allocation5 + $0xb0] sm:$0xff]  ;;  %s934_s24 = scalar_lea.vmem %s933_s23, 2048  ;;  %p935_p10 = scmp.lt.s32.totalorder %s1246_s29, %s933_s23 }
  0x53   : > { %308 = vmatpush1.msra.mxu0 %v289_v8  ;;  %763 = vmatprep.subr.mxu1 %v294_v13  ;;  %v274_v24 = vld [vmem:[#allocation5 + $0xa8] sm:$0xff]  ;;  %v272_v26 = vld [vmem:[#allocation5 + $0x98] sm:$0xff]  ;;  %v271_v27 = vld [vmem:[#allocation5 + $0x90] sm:$0xff] }
  0x54   : > { %309 = vmatprep.subr.mxu0 %v287_v10  ;;  %764 = vmatpush3.msra.mxu1 %v294_v13  ;;  %v282_v25 = vld [vmem:[#allocation5 + $0xe8] sm:$0xff]  ;;  %v279_v28 = vld [vmem:[#allocation5 + $0xd0] sm:$0xff]  ;;  %v269_v29 = vld [vmem:[#allocation5 + $0x80] sm:$0xff] }
  0x55   : > { %310 = vmatpush1.msra.mxu0 %v286_v12  ;;  %765 = vmatprep.subr.mxu1 %v291_v16  ;;  %v268_v30 = vld [vmem:[#allocation5 + $0x78] sm:$0xff]  ;;  %v266_v32 = vld [vmem:[#allocation5 + $0x68] sm:$0xff]  ;;  %v265_v33 = vld [vmem:[#allocation5 + $0x60] sm:$0xff] }
  0x56   : > { %311 = vmatprep.subr.mxu0 %v284_v14  ;;  %766 = vmatpush3.msra.mxu1 %v291_v16  ;;  %v276_v31 = vld [vmem:[#allocation5 + $0xb8] sm:$0xff]  ;;  %v273_v34 = vld [vmem:[#allocation5 + $0xa0] sm:$0xff]  ;;  %v263_v35 = vld [vmem:[#allocation5 + $0x50] sm:$0xff] }
  0x57   : > { %312 = vmatpush1.msra.mxu0 %v283_v15  ;;  %767 = vmatprep.subr.mxu1 %v288_v19  ;;  %v262_v36 = vld [vmem:[#allocation5 + $0x48] sm:$0xff]  ;;  %v260_v38 = vld [vmem:[#allocation5 + $0x38] sm:$0xff]  ;;  %v259_v39 = vld [vmem:[#allocation5 + $0x30] sm:$0xff] }
  0x58   : > { %313 = vmatprep.subr.mxu0 %v281_v17  ;;  %768 = vmatpush3.msra.mxu1 %v288_v19  ;;  %v270_v37 = vld [vmem:[#allocation5 + $0x88] sm:$0xff]  ;;  %v267_v40 = vld [vmem:[#allocation5 + $0x70] sm:$0xff]  ;;  %v257_v41 = vld [vmem:[#allocation5 + $0x20] sm:$0xff] }
  0x59   : > { %314 = vmatpush1.msra.mxu0 %v280_v18  ;;  %769 = vmatprep.subr.mxu1 %v285_v22  ;;  %v256_v42 = vld [vmem:[#allocation5 + $0x18] sm:$0xff]  ;;  %v254_v44 = vld [vmem:[#allocation5 + $0x8] sm:$0xff]  ;;  %v253_v45 = vld [vmem:[#allocation5] sm:$0xff] }
  0x5a   : > { %315 = vmatprep.subr.mxu0 %v278_v20  ;;  %770 = vmatpush3.msra.mxu1 %v285_v22  ;;  %v264_v43 = vld [vmem:[#allocation5 + $0x58] sm:$0xff]  ;;  %v261_v46 = vld [vmem:[#allocation5 + $0x40] sm:$0xff]  ;;  %v258_v48 = vld [vmem:[#allocation5 + $0x28] sm:$0xff] }
  0x5b   : > { %316 = vmatpush1.msra.mxu0 %v277_v21  ;;  %771 = vmatprep.subr.mxu1 %v282_v25  ;;  %v245_v47 = vld [vmem:[%s1188_s8] sm:$0xff]  ;;  %v255_v49 = vld [vmem:[#allocation5 + $0x10] sm:$0xff]  ;;  %v246_v50 = vld [vmem:[%s1188_s8 + $0x8] sm:$0xff] }
  0x5c   : > { %317 = vmatprep.subr.mxu0 %v275_v23  ;;  %772 = vmatpush3.msra.mxu1 %v282_v25  ;;  %v247_v51 = vld [vmem:[%s1188_s8 + $0x10] sm:$0xff]  ;;  %v248_v52 = vld [vmem:[%s1188_s8 + $0x18] sm:$0xff]  ;;  %v249_v53 = vld [vmem:[%s1188_s8 + $0x20] sm:$0xff] }
  0x5d   : > { %318 = vmatpush1.msra.mxu0 %v274_v24  ;;  %773 = vmatprep.subr.mxu1 %v279_v28  ;;  %v251_v54 = vld [vmem:[%s1188_s8 + $0x30] sm:$0xff]  ;;  %v250_v55 = vld [vmem:[%s1188_s8 + $0x28] sm:$0xff]  ;;  %v252_v56 = vld [vmem:[%s1188_s8 + $0x38] sm:$0xff]  ;;  %s928_s8 = scalar_lea.vmem %s1246_s29, 1024 }
  0x5e   : > { %319 = vmatprep.subr.mxu0 %v272_v26  ;;  %774 = vmatpush3.msra.mxu1 %v279_v28  ;;  %v721_v57 = vld [vmem:[%s1332_s2] ss:$0 sm:$0xff]  ;;  %p929_p3 = scmp.ne.s32.totalorder %s1246_s29, %s928_s8  ;;  %p936_p2 = scmp.lt.s32.totalorder %s934_s24, %s928_s8 }
  0x5f   : > { %320 = vmatpush1.msra.mxu0 %v271_v27  ;;  %775 = vmatprep.subr.mxu1 %v276_v31 }
  0x60   : > { %321 = vmatprep.subr.mxu0 %v269_v29  ;;  %776 = vmatpush3.msra.mxu1 %v276_v31  ;;  %p930_p7 = pnand %p929_p3, %p1350_p11  ;;  %p937_p13 = por %p936_p2, %p935_p10 }
  0x61   : > { %322 = vmatpush1.msra.mxu0 %v268_v30  ;;  %777 = vmatprep.subr.mxu1 %v273_v34 }
  0x62   : > { %323 = vmatprep.subr.mxu0 %v266_v32  ;;  %778 = vmatpush3.msra.mxu1 %v273_v34  ;;  %p931_p12 = pneg %p930_p7 }
  0x63   : > { %324 = vmatpush1.msra.mxu0 %v265_v33  ;;  %779 = vmatprep.subr.mxu1 %v270_v37 }
  0x64   : > { %325 = vmatprep.subr.mxu0 %v263_v35  ;;  %780 = vmatpush3.msra.mxu1 %v270_v37  ;;  %p938_p0 = pnand %p937_p13, %p931_p12 }
  0x65   : > { %326 = vmatpush1.msra.mxu0 %v262_v36  ;;  %781 = vmatprep.subr.mxu1 %v267_v40 }
  0x66   : > { %327 = vmatprep.subr.mxu0 %v260_v38  ;;  %782 = vmatpush3.msra.mxu1 %v267_v40 }
  0x67   : > { %328 = vmatpush1.msra.mxu0 %v259_v39  ;;  %783 = vmatprep.subr.mxu1 %v264_v43 }
  0x68   : > { %329 = vmatprep.subr.mxu0 %v257_v41  ;;  %784 = vmatpush3.msra.mxu1 %v264_v43 }
  0x69   : > { %330 = vmatpush1.msra.mxu0 %v256_v42  ;;  %785 = vmatprep.subr.mxu1 %v261_v46 }
  0x6a   : > { %331 = vmatprep.subr.mxu0 %v254_v44  ;;  %786 = vmatpush3.msra.mxu1 %v261_v46 }
  0x6b   : > { %332 = vmatpush1.msra.mxu0 %v253_v45  ;;  %787 = vmatprep.subr.mxu1 %v258_v48 }
  0x6c   : > { %366 = vmatmul.mubr.f32.vlgmr.msra.gmra.mxu0 %v245_v47  ;;  %788 = vmatpush3.msra.mxu1 %v258_v48 }
  0x6d   : > { %371 = vmatprep.mubr.f32.mxu0 %v1034_v0  ;;  %791 = vmatprep.mubr.f32.mxu1 %v245_v47 }
  0x6e   : > { %789 = vmatprep.subr.mxu1 %v255_v49 }
  0x6f   : > { %790 = vmatpush3.msra.mxu1 %v255_v49 }
  0x70   : > { %372 = vmatmul.mubr.f32.gmra.mxu0 %v246_v50  ;;  %792 = vmatmul.mubr.f32.vlgmr.msra.gmra.mxu1 %v246_v50 }
  0x71   : > { %377 = vmatprep.mubr.f32.mxu0 %v1034_v0  ;;  %794 = vmatprep.mubr.f32.mxu1 %v247_v51 }
  0x74   : > { %378 = vmatmul.mubr.f32.gmra.mxu0 %v247_v51  ;;  %795 = vmatmul.mubr.f32.gmra.mxu1 %v248_v52 }
  0x75   : > { %383 = vmatprep.mubr.f32.mxu0 %v1034_v0  ;;  %797 = vmatprep.mubr.f32.mxu1 %v249_v53 }
  0x78   : > { %384 = vmatmul.mubr.f32.gmra.mxu0 %v248_v52  ;;  %798 = vmatmul.mubr.f32.gmra.mxu1 %v250_v55 }
  0x79   : > { %389 = vmatprep.mubr.f32.mxu0 %v1034_v0  ;;  %800 = vmatprep.mubr.f32.mxu1 %v251_v54 }
  0x7c   : > { %390 = vmatmul.mubr.f32.gmra.mxu0 %v249_v53  ;;  %801 = vmatmul.mubr.f32.gmra.mxu1 %v252_v56 }
  0x7d   : > { %395 = vmatprep.mubr.f32.mxu0 %v1034_v0 }
  0x80   : > { %396 = vmatmul.mubr.f32.gmra.mxu0 %v250_v55 }
  0x81   : > { %401 = vmatprep.mubr.f32.mxu0 %v1034_v0 }
  0x84   : > { %402 = vmatmul.mubr.f32.gmra.mxu0 %v251_v54 }
  0x85   : > { %407 = vmatprep.mubr.f32.mxu0 %v1034_v0 }
  0x88   : > { %408 = vmatmul.mubr.f32.gmra.mxu0 %v252_v56 }
 0x12c   : > { %v367_v58 = vpop.f32.mrf.mxu0 }
 0x12d   : > { %v526_v59 = vadd.f32 %v721_v57, %v367_v58 }
 0x12e   : > { %v369_v60 = vpop.f32.mrf.mxu0 }
 0x12f   : > { %534 = vst [vmem:[%s1220_s26] sm:$0xff] %v526_v59  ;;  %542 = vst [vmem:[%s1223_s28] sm:$0xff] %v369_v60 }
 0x130   : > { %v373_v61 = vpop.f32.mrf.mxu0  ;;  %v793_v63 = vpop.f32.mrf.mxu1 }
 0x131   : > { %v527_v62 = vadd.f32 %v721_v57, %v373_v61  ;;  %545 = vst [vmem:[%s1223_s28 + $0x18] sm:$0xff] %v793_v63 }
 0x132   : > { %v375_v0 = vpop.f32.mrf.mxu0  ;;  %v480_v1 = vpop.f32.mrf.mxu1 }
 0x133   : > { %535 = vst [vmem:[%s1220_s26 + $0x8] sm:$0xff] %v527_v62  ;;  %544 = vst [vmem:[%s1223_s28 + $0x10] sm:$0xff] %v375_v0 }
 0x134   : > { %v379_v2 = vpop.f32.mrf.mxu0  ;;  %543 = vst [vmem:[%s1223_s28 + $0x8] sm:$0xff] %v480_v1  ;;  %v796_v4 = vpop.f32.mrf.mxu1 }
 0x135   : > { %v528_v3 = vadd.f32 %v721_v57, %v379_v2  ;;  %549 = vst [vmem:[%s1223_s28 + $0x38] sm:$0xff] %v796_v4 }
 0x136   : > { %v381_v5 = vpop.f32.mrf.mxu0  ;;  %v490_v6 = vpop.f32.mrf.mxu1 }
 0x137   : > { %536 = vst [vmem:[%s1220_s26 + $0x10] sm:$0xff] %v528_v3  ;;  %546 = vst [vmem:[%s1223_s28 + $0x20] sm:$0xff] %v381_v5 }
 0x138   : > { %v385_v7 = vpop.f32.mrf.mxu0  ;;  %547 = vst [vmem:[%s1223_s28 + $0x28] sm:$0xff] %v490_v6  ;;  %v799_v9 = vpop.f32.mrf.mxu1 }
 0x139   : > { %v529_v8 = vadd.f32 %v721_v57, %v385_v7  ;;  %553 = vst [vmem:[%s1223_s28 + $0x58] sm:$0xff] %v799_v9 }
 0x13a   : > { %v387_v10 = vpop.f32.mrf.mxu0  ;;  %v500_v11 = vpop.f32.mrf.mxu1 }
 0x13b   : > { %537 = vst [vmem:[%s1220_s26 + $0x18] sm:$0xff] %v529_v8  ;;  %548 = vst [vmem:[%s1223_s28 + $0x30] sm:$0xff] %v387_v10 }
 0x13c   : > { %v391_v12 = vpop.f32.mrf.mxu0  ;;  %551 = vst [vmem:[%s1223_s28 + $0x48] sm:$0xff] %v500_v11  ;;  %v802_v14 = vpop.f32.mrf.mxu1 }
 0x13d   : > { %v530_v13 = vadd.f32 %v721_v57, %v391_v12  ;;  %557 = vst [vmem:[%s1223_s28 + $0x78] sm:$0xff] %v802_v14 }
 0x13e   : > { %v393_v15 = vpop.f32.mrf.mxu0  ;;  %v510_v16 = vpop.f32.mrf.mxu1 }
 0x13f   : > { %538 = vst [vmem:[%s1220_s26 + $0x20] sm:$0xff] %v530_v13  ;;  %550 = vst [vmem:[%s1223_s28 + $0x40] sm:$0xff] %v393_v15 }
 0x140   : > { %v397_v17 = vpop.f32.mrf.mxu0  ;;  %555 = vst [vmem:[%s1223_s28 + $0x68] sm:$0xff] %v510_v16 }
 0x141   : > { %v531_v18 = vadd.f32 %v721_v57, %v397_v17 }
 0x142   : > { %v399_v19 = vpop.f32.mrf.mxu0 }
 0x143   : > { %539 = vst [vmem:[%s1220_s26 + $0x28] sm:$0xff] %v531_v18  ;;  %552 = vst [vmem:[%s1223_s28 + $0x50] sm:$0xff] %v399_v19 }
 0x144   : > { %v403_v20 = vpop.f32.mrf.mxu0 }
 0x145   : > { %v532_v21 = vadd.f32 %v721_v57, %v403_v20 }
 0x146   : > { %v405_v22 = vpop.f32.mrf.mxu0 }
 0x147   : > { %540 = vst [vmem:[%s1220_s26 + $0x30] sm:$0xff] %v532_v21  ;;  %554 = vst [vmem:[%s1223_s28 + $0x60] sm:$0xff] %v405_v22 }
 0x148   : > { %v409_v23 = vpop.f32.mrf.mxu0 }
 0x149   : > { %v533_v24 = vadd.f32 %v721_v57, %v409_v23 }
 0x14a   : > { %v411_v25 = vpop.f32.mrf.mxu0 }
 0x14b   : > { %541 = vst [vmem:[%s1220_s26 + $0x38] sm:$0xff] %v533_v24  ;;  %556 = vst [vmem:[%s1223_s28 + $0x70] sm:$0xff] %v411_v25 }
 0x14c   : > { %941 = shalt.err (!%p938_p0)
}
 0x14d   : > { %s942_s26 = scalar_lea.hbm %s1252_s20, 1024  ;;  %s946_s11 = scalar_lea.hbm %s1333_s3, 2048 }
 0x14e   : > { %p943_p5 = scmp.ne.s32.totalorder %s1252_s20, %s942_s26  ;;  %p947_p4 = scmp.lt.s32.totalorder %s1252_s20, %s1333_s3 }
 0x14f   : > { %p948_p6 = scmp.lt.s32.totalorder %s946_s11, %s942_s26 }
 0x150   : > { %p944_p9 = pnand %p943_p5, %p1350_p11 }
 0x151   : > { %p949_p8 = por %p948_p6, %p947_p4 }
 0x152   : > { %p945_p1 = pneg %p944_p9 }
 0x154   : > { %p950_p3 = pnand %p949_p8, %p945_p1 }
 0x156   : > { %953 = shalt.err (!%p950_p3)
}
 0x157   : > { %s1036_s30 = smov 128   ;;  %s1037_s6 = smov 8  }
 0x158   : > { %809 = dma.vmem_to_hbm [thread:$0]  (%p1350_p11), %s1246_s29, 1024, %s1252_s20, %s559_s19, %s1036_s30, %s1036_s30, %s1037_s6  }
 0x159   : > { %s564_s8 = scalar_lea.sflag [#allocation9], %s1182_s5  ;;  %s954_s21 = scalar_lea.vmem %s1262_s25, 2048 }
 0x15a   : > { %p955_p7 = scmp.ne.s32.totalorder %s1262_s25, %s954_s21  ;;  %s1038_s23 = smov [#allocation8]  }
 0x15b   : > { %s958_s24 = sshll.u32 %s1038_s23, 4  ;;  %s959_s24 = int_to_ptr.vmem [resolvable:$false] %s958_s24 }
 0x15c   : > { %p956_p12 = pnand %p955_p7, %p1350_p11  ;;  %s960_s26 = scalar_lea.vmem %s959_s24, 4096 }
 0x15d   : > { %p961_p2 = scmp.lt.s32.totalorder %s1262_s25, %s959_s24  ;;  %p962_p13 = scmp.lt.s32.totalorder %s960_s26, %s954_s21 }
 0x15e   : > { %p957_p10 = pneg %p956_p12 }
 0x15f   : > { %p963_p0 = por %p962_p13, %p961_p2 }
 0x161   : > { %p964_p5 = pnand %p963_p0, %p957_p10 }
 0x163   : > { %967 = shalt.err (!%p964_p5)
}
 0x164   : > { %s968_s29 = scalar_lea.hbm %s1260_s7, 2048  ;;  %s972_s28 = scalar_lea.hbm %s1334_s4, 4096 }
 0x165   : > { %p969_p9 = scmp.ne.s32.totalorder %s1260_s7, %s968_s29  ;;  %p973_p6 = scmp.lt.s32.totalorder %s1260_s7, %s1334_s4 }
 0x166   : > { %p974_p8 = scmp.lt.s32.totalorder %s972_s28, %s968_s29 }
 0x167   : > { %p970_p1 = pnand %p969_p9, %p1350_p11 }
 0x168   : > { %p975_p3 = por %p974_p8, %p973_p6 }
 0x169   : > { %p971_p4 = pneg %p970_p1 }
 0x16b   : > { %p976_p7 = pnand %p975_p3, %p971_p4 }
 0x16d   : > { %979 = shalt.err (!%p976_p7)
}
 0x16e   : > { %s1039_s13 = smov 256   ;;  %s1040_s14 = smov 16  }
 0x16f   : > { %810 = dma.vmem_to_hbm [thread:$0]  (%p1350_p11), %s1262_s25, 2048, %s1260_s7, %s564_s8, %s1039_s13, %s1039_s13, %s1040_s14  }
 0x170 PF: > { %s609_s30 = sand.u32 1, %s1014_s15   ;;  %p1351_p12 = scmp.ne.s32.totalorder %s1340_s22, 0 }
 0x171   : > { %p1352_p10 = scmp.ge.s32.totalorder %s1026_s18, 2  ;;  %s610_s6 = scalar_lea.sflag [#allocation4], %s609_s30 }
 0x173   : > { %p822_p2 = pnand %p1352_p10, %p1351_p12 }
 0x175   : > { %p823_p13 = pneg %p822_p2 }
 0x177   : > { %1005 = dma.done.wait (%p823_p13), %s610_s6, 1024  }
 0x178   : > { %1007 = vsyncadd (%p823_p13), %s610_s6, 4294966272  ;;  %s619_s21 = scalar_lea.sflag [#allocation9], %s609_s30 }
 0x179   : > { %1009 = dma.done.wait (%p823_p13), %s619_s21, 2048  }
 0x17a   : > { %1011 = vsyncadd (%p823_p13), %s619_s21, 4294965248  ;;  %p22_p11 = scmp.ge.s32.totalorder %s1120_s27, 4   ;;  %s1353_s15 = smov %s1018_s16 }
 0x17b   : > { %s1354_s16 = smov %s1022_s17  ;;  %s1355_s17 = smov %s1137_s9 }
 0x17c   : > { %s1356_s18 = smov %s1120_s27  ;;  %24 = sbr.rel (!%p22_p11) target bundleno = 8 (0x8), region = 98 }
 0x181   :  { %624 = vsyncpa [#allocation3], 1 }
 0x182   :  { %626 = vsyncpa [#allocation3 + $0x1], 1 }
 0x183   :  { %627 = vsyncpa [#allocation6], 1 }
 0x184   :  { %628 = vsyncpa [#allocation4], 1 }
 0x185   :  { %630 = vsyncpa [#allocation4 + $0x1], 1 }
 0x186   :  { %631 = vsyncpa [#allocation9], 1 }
 0x187   :  { %633 = vsyncpa [#allocation9 + $0x1], 1 }

</bundles_post_ra>
